<compile_context>
chip_gen: v6e
topology: v6e:2x2x1
jax: 0.10.0
libtpu: 0.0.40
codegen_flags: <defaults>
</compile_context>

<pallas_src>
import functools
import math

import jax
import jax.numpy as jnp
from jax.experimental import pallas as pl
from jax.experimental.pallas import tpu as pltpu

_LANES = 128  # TPU vreg lane width


def _round_up(x, m):
    return (x + m - 1) // m * m


def _vmem_and_block_m():
    """Generation-dependent VMEM budget and default M tile for the 1x1 kernels.

    v5e / v6e have 128 MiB physical VMEM -> raise the scoped limit and use big
    M tiles; v7x has only 64 MiB -> stay conservative."""
    try:
        cap = int(pltpu.get_tpu_info().vmem_capacity_bytes)
    except Exception:            # unknown chip / API change: be conservative
        cap = 64 * 1024 * 1024
    if cap >= 96 * 1024 * 1024:  # v5e / v6e class (128 MiB physical)
        return 80 * 1024 * 1024, 2048
    return 40 * 1024 * 1024, 1024  # v7x class (64 MiB) and fallback


# ---------------------------------------------------------------------------
# Kernel A: fused [optional input BN+PReLU] -> 1x1 conv (MXU matmul) ->
# training-mode BatchNorm -> [optional PReLU].
# grid = (2, M//TM): pass 0 accumulates per-channel statistics, pass 1
# recomputes the cheap matmul and normalizes (cheaper than a y round-trip).
# ---------------------------------------------------------------------------
def _conv1x1_bn_act_kernel(x_ref, w_ref, gamma_ref, beta_ref, alpha_ref,
                           isc_ref, ish_ref, ial_ref, o_ref,
                           sum_ref, sumsq_ref, scale_ref, shift_ref,
                           *, m_valid, eps, pre_act, post_prelu, mask_rows):
    p = pl.program_id(0)                 # 0 = stats pass, 1 = normalize pass
    i = pl.program_id(1)                 # M-tile index
    n_tiles = pl.num_programs(1)

    x = x_ref[...]
    if pre_act:
        # Folded BN + PReLU of the *previous* stage, applied on the fly to the
        # unnormalized activations (f32 math, then back to the MXU dtype).
        xf = x.astype(jnp.float32) * isc_ref[...] + ish_ref[...]
        xf = jnp.where(xf > 0, xf, ial_ref[...] * xf)
        x = xf.astype(x_ref.dtype)

    # 1x1 conv == (TM, Cin) @ (Cin, Coutp) on the MXU, f32 accumulation.
    y = jnp.dot(x, w_ref[...], preferred_element_type=jnp.float32)

    @pl.when(p == 0)
    def _stats_pass():
        @pl.when(i == 0)
        def _init():
            sum_ref[...] = jnp.zeros_like(sum_ref)
            sumsq_ref[...] = jnp.zeros_like(sumsq_ref)

        if mask_rows:
            # Padded rows must not contaminate the statistics (they are only
            # guaranteed to be exactly zero when pre_act is off).
            ridx = jax.lax.broadcasted_iota(jnp.int32, y.shape, 0) + i * y.shape[0]
            yv = jnp.where(ridx < m_valid, y, 0.0)
        else:
            yv = y
        sum_ref[...] += jnp.sum(yv, axis=0, keepdims=True)
        sumsq_ref[...] += jnp.sum(yv * yv, axis=0, keepdims=True)

        @pl.when(i == n_tiles - 1)
        def _finalize():
            inv_m = 1.0 / float(m_valid)
            mean = sum_ref[...] * inv_m
            var = jnp.maximum(sumsq_ref[...] * inv_m - mean * mean, 0.0)
            inv_std = jax.lax.rsqrt(var + eps)            # EUP slot
            scale = gamma_ref[...] * inv_std              # fold BN into one FMA
            scale_ref[...] = scale
            shift_ref[...] = beta_ref[...] - mean * scale

    @pl.when(p == 1)
    def _normalize_pass():
        z = y * scale_ref[...] + shift_ref[...]
        if post_prelu:                                    # per-channel PReLU
            z = jnp.where(z > 0, z, alpha_ref[...] * z)
        o_ref[...] = z.astype(o_ref.dtype)


def _conv1x1_bn_act(x2, w, gamma, beta, alpha, *, eps, post_prelu, block_m,
                    compute_dtype, out_dtype, vmem_limit,
                    in_scale=None, in_shift=None, in_alpha=None):
    """x2: (M, Cin) channels-last rows, w: (Cin, Cout).

    Returns (M, Coutp) with Cout zero-padded to a multiple of 128 lanes
    (padded output channels are exactly zero).  If in_scale/in_shift/in_alpha
    are given, a folded BN + PReLU is applied to x before the matmul."""
    m, cin = x2.shape
    assert w.shape[0] == cin
    cout = w.shape[1]
    coutp = _round_up(cout, _LANES)
    pre_act = in_scale is not None

    tm = max(8, min(_round_up(block_m, 8), _round_up(m, 8)))
    mp = _round_up(m, tm)
    n_tiles = mp // tm

    xp = x2.astype(compute_dtype)
    if mp != m:
        xp = jnp.pad(xp, ((0, mp - m), (0, 0)))
    wp = jnp.pad(w, ((0, 0), (0, coutp - cout))).astype(compute_dtype)
    gp = jnp.pad(gamma, (0, coutp - cout)).reshape(1, coutp).astype(jnp.float32)
    bp = jnp.pad(beta, (0, coutp - cout)).reshape(1, coutp).astype(jnp.float32)
    ap = jnp.pad(alpha, (0, coutp - cout)).reshape(1, coutp).astype(jnp.float32)

    if pre_act:
        isc = in_scale.reshape(1, cin).astype(jnp.float32)
        ish = in_shift.reshape(1, cin).astype(jnp.float32)
        ial = in_alpha.reshape(1, cin).astype(jnp.float32)
    else:                                   # identity placeholders (unused)
        isc = jnp.ones((1, cin), jnp.float32)
        ish = jnp.zeros((1, cin), jnp.float32)
        ial = jnp.ones((1, cin), jnp.float32)

    kernel = functools.partial(_conv1x1_bn_act_kernel, m_valid=m, eps=eps,
                               pre_act=pre_act, post_prelu=post_prelu,
                               mask_rows=(mp != m))
    out = pl.pallas_call(
        kernel,
        out_shape=jax.ShapeDtypeStruct((mp, coutp), out_dtype),
        grid=(2, n_tiles),
        in_specs=[
            pl.BlockSpec((tm, cin), lambda p, i: (i, 0)),      # activations
            pl.BlockSpec((cin, coutp), lambda p, i: (0, 0)),   # weight (resident)
            pl.BlockSpec((1, coutp), lambda p, i: (0, 0)),     # BN gamma
            pl.BlockSpec((1, coutp), lambda p, i: (0, 0)),     # BN beta
            pl.BlockSpec((1, coutp), lambda p, i: (0, 0)),     # PReLU alpha
            pl.BlockSpec((1, cin), lambda p, i: (0, 0)),       # input scale
            pl.BlockSpec((1, cin), lambda p, i: (0, 0)),       # input shift
            pl.BlockSpec((1, cin), lambda p, i: (0, 0)),       # input PReLU alpha
        ],
        # GUARD: pass 0 never writes the output, so during pass 0 the output is
        # parked on block (0,0) (never flushed because the index does not
        # change); pass 1 then visits every lane-dense tile exactly once.  This
        # relies on the pass axis being the OUTERMOST, SEQUENTIAL grid axis --
        # do not reorder the grid or mark these axes 'parallel'.
        out_specs=pl.BlockSpec((tm, coutp), lambda p, i: (i * p, 0)),
        scratch_shapes=[
            pltpu.VMEM((1, coutp), jnp.float32),   # per-channel sum
            pltpu.VMEM((1, coutp), jnp.float32),   # per-channel sum of squares
            pltpu.VMEM((1, coutp), jnp.float32),   # folded scale
            pltpu.VMEM((1, coutp), jnp.float32),   # folded shift
        ],
        compiler_params=pltpu.CompilerParams(
            dimension_semantics=("arbitrary", "arbitrary"),
            vmem_limit_bytes=vmem_limit,
        ),
    )(xp, wp, gp, bp, ap, isc, ish, ial)
    return out[:m]


# ---------------------------------------------------------------------------
# Kernel B: depthwise KxK stride-S conv, SINGLE pass.
# grid = (N images, Ho/R row blocks).  Writes the UNNORMALIZED conv output and
# accumulates per-channel sum / sum-of-squares directly into two small
# output-resident f32 accumulators (constant-index out BlockSpecs).  BN+PReLU
# of this stage are folded into the next 1x1 kernel's input path.
# ---------------------------------------------------------------------------
def _dwconv_stats_kernel(x_ref, w_ref, o_ref, sum_ref, sumsq_ref,
                         *, kh, kw, stride, rows):
    b = pl.program_id(0)                  # image
    rb = pl.program_id(1)                 # output-row block

    @pl.when(jnp.logical_and(b == 0, rb == 0))
    def _init():
        sum_ref[...] = jnp.zeros_like(sum_ref)
        sumsq_ref[...] = jnp.zeros_like(sumsq_ref)

    _, wo, cp = o_ref.shape               # (rows, Wo, Cp)

    # Load all tap weights once per grid step (lane-aligned slices).
    w_all = w_ref[...]                    # (1, kh*kw*Cp) f32
    taps = [w_all[:, t * cp:(t + 1) * cp] for t in range(kh * kw)]

    part_sum = jnp.zeros((1, cp), jnp.float32)
    part_sq = jnp.zeros((1, cp), jnp.float32)
    for rr in range(rows):                                 # static, unrolled
        base = (rb * rows + rr) * stride                   # padded-input row
        acc = jnp.zeros((wo, cp), jnp.float32)
        for dh in range(kh):
            # Hoist the row load + f32 cast out of the kw tap loop.
            xrow = x_ref[base + dh].astype(jnp.float32)    # (Wq, stride*Cp)
            for dw in range(kw):
                q, r = divmod(dw, stride)
                # Wrapper folded the W stride-phase into the lane axis, so
                # every tap is a contiguous 128-aligned (Wo, Cp) slice.
                xtap = xrow[q:q + wo, r * cp:(r + 1) * cp]
                acc = acc + xtap * taps[dh * kw + dw]
        o_ref[rr] = acc.astype(o_ref.dtype)                # unnormalized out
        part_sum = part_sum + jnp.sum(acc, axis=0, keepdims=True)
        part_sq = part_sq + jnp.sum(acc * acc, axis=0, keepdims=True)
    sum_ref[...] += part_sum
    sumsq_ref[...] += part_sq


def _dwconv_stats(xh, wd, *, stride, padding, block_rows, compute_dtype,
                  out_dtype, vmem_limit):
    """xh: (N, H, W, Cp) channels-last, Cp lane-padded (padded channels zero).
    wd: (C, kh, kw) depthwise filters.

    Returns (y_unnorm (N, Ho, Wo, Cp), chan_sum (1, Cp), chan_sumsq (1, Cp))."""
    n, h, w, cp = xh.shape
    c, kh, kw = wd.shape
    ho = (h + 2 * padding - kh) // stride + 1
    wo = (w + 2 * padding - kw) // stride + 1

    # R output rows per grid step; R divides Ho so no garbage rows exist and
    # no post-slice copy is needed.
    rows = max(1, min(block_rows, ho))
    while ho % rows:
        rows -= 1
    n_rb = ho // rows

    hp = max(h + 2 * padding, (ho - 1) * stride + kh)
    wp = w + 2 * padding
    wq = -(-wp // stride)                       # cdiv(wp, stride)
    extra_w = wq * stride - wp

    # Zero spatial padding (== Conv2d zero padding); the extra right-hand
    # columns from rounding W up to a multiple of `stride` are never read.
    xpad = jnp.pad(xh.astype(compute_dtype),
                   ((0, 0), (padding, hp - h - padding),
                    (padding, padding + extra_w), (0, 0)))
    # Free reshape: fold the W stride-phase into the lane axis.
    x4 = xpad.reshape(n, hp, wq, stride * cp)

    # Taps laid out on lanes: tap (dh,dw) occupies lanes [(dh*kw+dw)*Cp, +Cp).
    w2 = jnp.transpose(wd.reshape(c, kh * kw), (1, 0))           # (kh*kw, C)
    w2 = jnp.pad(w2, ((0, 0), (0, cp - c))).astype(jnp.float32)
    w2 = w2.reshape(1, kh * kw * cp)

    kernel = functools.partial(_dwconv_stats_kernel, kh=kh, kw=kw,
                               stride=stride, rows=rows)
    y_unnorm, s, sq = pl.pallas_call(
        kernel,
        out_shape=(jax.ShapeDtypeStruct((n, ho, wo, cp), out_dtype),
                   jax.ShapeDtypeStruct((1, cp), jnp.float32),
                   jax.ShapeDtypeStruct((1, cp), jnp.float32)),
        grid=(n, n_rb),
        in_specs=[
            # Whole padded image resident while its output-row blocks stream.
            pl.BlockSpec((None, hp, wq, stride * cp), lambda b, r: (b, 0, 0, 0)),
            pl.BlockSpec((1, kh * kw * cp), lambda b, r: (0, 0)),
        ],
        out_specs=(
            pl.BlockSpec((None, rows, wo, cp), lambda b, r: (b, r, 0, 0)),
            pl.BlockSpec((1, cp), lambda b, r: (0, 0)),   # resident accumulator
            pl.BlockSpec((1, cp), lambda b, r: (0, 0)),   # resident accumulator
        ),
        compiler_params=pltpu.CompilerParams(
            # Sequential stats accumulation -> both axes 'arbitrary'.
            dimension_semantics=("arbitrary", "arbitrary"),
            vmem_limit_bytes=vmem_limit,
        ),
    )(x4, w2)
    return y_unnorm, s, sq


# ---------------------------------------------------------------------------
# DepthWise forward (NCHW in / NCHW out, like the PyTorch module).
# ---------------------------------------------------------------------------
def depthwise_forward(x, params, *, kernel=(3, 3), stride=2, padding=1,
                      eps=1e-5, block_m=None, block_rows=8,
                      compute_dtype=jnp.bfloat16):
    n, cin, h, w = x.shape
    g = params["w1"].shape[0]                  # groups (mid channels)
    cout = params["w3"].shape[0]
    kh, kw = kernel

    vmem_limit, bm_default = _vmem_and_block_m()
    if block_m is None:
        block_m = bm_default

    # Single layout change at the module boundary; all fused stages run
    # channels-last so channels sit on the 128-wide lane axis.
    xh = jnp.transpose(x, (0, 2, 3, 1))                          # (N,H,W,Cin)

    # --- stage 1: ConvBnPrelu 1x1, in_c -> groups ---------------------------
    # TODO(synk): for Cin <= ~16 a VPU broadcast-FMA path would avoid the
    # mostly-empty MXU K dimension; the stage is DMA-bound either way.
    w1 = jnp.transpose(params["w1"].reshape(g, cin), (1, 0))     # (Cin, G)
    y1 = _conv1x1_bn_act(xh.reshape(n * h * w, cin), w1,
                         params["g1"], params["b1"], params["a1"],
                         eps=eps, post_prelu=True, block_m=block_m,
                         compute_dtype=compute_dtype, out_dtype=compute_dtype,
                         vmem_limit=vmem_limit)
    gp = y1.shape[1]                                             # lane-padded G
    y1 = y1.reshape(n, h, w, gp)

    # --- stage 2: depthwise KxK / stride conv (unnormalized) + BN2 stats ----
    wd = params["wd"].reshape(g, kh, kw)
    y2u, s2, sq2 = _dwconv_stats(y1, wd, stride=stride, padding=padding,
                                 block_rows=block_rows,
                                 compute_dtype=compute_dtype,
                                 out_dtype=compute_dtype,
                                 vmem_limit=vmem_limit)
    _, ho, wo, _ = y2u.shape

    # Fold BN2 into a single per-channel scale/shift (tiny (1, Cp) math; padded
    # channels have sum == sumsq == 0 and zero-padded gamma -> scale/shift 0).
    m2 = float(n * ho * wo)
    mean2 = s2 / m2
    var2 = jnp.maximum(sq2 / m2 - mean2 * mean2, 0.0)
    g2p = jnp.pad(params["g2"], (0, gp - g)).reshape(1, gp).astype(jnp.float32)
    b2p = jnp.pad(params["b2"], (0, gp - g)).reshape(1, gp).astype(jnp.float32)
    a2p = jnp.pad(params["a2"], (0, gp - g)).reshape(1, gp).astype(jnp.float32)
    scale2 = g2p * jax.lax.rsqrt(var2 + eps)
    shift2 = b2p - mean2 * scale2

    # --- stage 3: [BN2+PReLU2 on input] + ConvBn 1x1, groups -> out_c -------
    w3 = jnp.transpose(params["w3"].reshape(cout, g), (1, 0))    # (G, Cout)
    w3 = jnp.pad(w3, ((0, gp - g), (0, 0)))    # zero rows for padded channels
    y3 = _conv1x1_bn_act(y2u.reshape(n * ho * wo, gp), w3,
                         params["g3"], params["b3"],
                         jnp.ones((cout,), jnp.float32),         # alpha unused
                         eps=eps, post_prelu=False, block_m=block_m,
                         compute_dtype=compute_dtype, out_dtype=jnp.float32,
                         vmem_limit=vmem_limit,
                         in_scale=scale2, in_shift=shift2, in_alpha=a2p)
    y3 = y3[:, :cout].reshape(n, ho, wo, cout)

    return jnp.transpose(y3, (0, 3, 1, 2)).astype(x.dtype)       # back to NCHW


# ---------------------------------------------------------------------------
# Plain-JAX f32 reference (training-mode BN, per-channel PReLU).
# ---------------------------------------------------------------------------
def _reference(x, p, *, kernel, stride, padding, eps=1e-5):
    kh, kw = kernel
    g = p["wd"].shape[0]
    dn = ("NCHW", "OIHW", "NCHW")
    hi = jax.lax.Precision.HIGHEST

    def bn(y, ga, be):
        m = jnp.mean(y, axis=(0, 2, 3), keepdims=True)
        v = jnp.mean((y - m) ** 2, axis=(0, 2, 3), keepdims=True)
        return ((y - m) * jax.lax.rsqrt(v + eps) * ga.reshape(1, -1, 1, 1)
                + be.reshape(1, -1, 1, 1))

    def prelu(y, a):
        return jnp.where(y > 0, y, a.reshape(1, -1, 1, 1) * y)

    y = jax.lax.conv_general_dilated(x, p["w1"], (1, 1), "VALID",
                                     dimension_numbers=dn, precision=hi)
    y = prelu(bn(y, p["g1"], p["b1"]), p["a1"])
    y = jax.lax.conv_general_dilated(y, p["wd"], (stride, stride),
                                     [(padding, padding), (padding, padding)],
                                     dimension_numbers=dn,
                                     feature_group_count=g, precision=hi)
    y = prelu(bn(y, p["g2"], p["b2"]), p["a2"])
    y = jax.lax.conv_general_dilated(y, p["w3"], (1, 1), "VALID",
                                     dimension_numbers=dn, precision=hi)
    return bn(y, p["g3"], p["b3"])


if __name__ == "__main__":
    key = jax.random.PRNGKey(0)
    ks = jax.random.split(key, 10)

    N, Cin, G, Cout, H, W = 2, 4, 8, 8, 16, 16
    stride, padding, kh, kw = 2, 1, 3, 3

    x = jax.random.normal(ks[0], (N, Cin, H, W), jnp.float32)
    params = dict(
        w1=jax.random.normal(ks[1], (G, Cin, 1, 1), jnp.float32) / math.sqrt(Cin),
        g1=1.0 + 0.1 * jax.random.normal(ks[2], (G,), jnp.float32),
        b1=0.1 * jax.random.normal(ks[3], (G,), jnp.float32),
        a1=jnp.full((G,), 0.25, jnp.float32),
        wd=jax.random.normal(ks[4], (G, 1, kh, kw), jnp.float32) / 3.0,
        g2=1.0 + 0.1 * jax.random.normal(ks[5], (G,), jnp.float32),
        b2=0.1 * jax.random.normal(ks[6], (G,), jnp.float32),
        a2=jnp.full((G,), 0.25, jnp.float32),
        w3=jax.random.normal(ks[7], (Cout, G, 1, 1), jnp.float32) / math.sqrt(G),
        g3=1.0 + 0.1 * jax.random.normal(ks[8], (Cout,), jnp.float32),
        b3=0.1 * jax.random.normal(ks[9], (Cout,), jnp.float32),
    )

    ref = _reference(x, params, kernel=(kh, kw), stride=stride, padding=padding)
    ref = jax.block_until_ready(ref)

    # f32 path: tight numerical check; block_m=128 / block_rows=4 force
    # multi-tile grids in all three kernels even at this toy size.
    out_f32 = depthwise_forward(x, params, kernel=(kh, kw), stride=stride,
                                padding=padding, block_m=128, block_rows=4,
                                compute_dtype=jnp.float32)
    out_f32 = jax.block_until_ready(out_f32)
    assert out_f32.shape == ref.shape
    assert jnp.allclose(out_f32, ref, atol=1e-2, rtol=1e-2), (
        "f32 mismatch, max abs err = %e"
        % float(jnp.max(jnp.abs(out_f32 - ref))))

    # bf16 fast path with generation-tuned defaults (bf16 activations + MXU
    # operands, f32 statistics and folded scale/shift).
    out_bf16 = depthwise_forward(x, params, kernel=(kh, kw), stride=stride,
                                 padding=padding)
    out_bf16 = jax.block_until_ready(out_bf16)
    assert jnp.allclose(out_bf16, ref, atol=1e-1, rtol=1e-1), (
        "bf16 mismatch, max abs err = %e"
        % float(jnp.max(jnp.abs(out_bf16 - ref))))

    print("KERNEL_OK")
</pallas_src>

<mosaic_0001>
module attributes {stable_mosaic.version = 11 : i64} {
  func.func @_conv1x1_bn_act_kernel(%arg0: i32, %arg1: i32, %arg2: memref<128x4xf32, #tpu.memory_space<vmem>>, %arg3: memref<4x128xf32, #tpu.memory_space<vmem>>, %arg4: memref<1x128xf32, #tpu.memory_space<vmem>>, %arg5: memref<1x128xf32, #tpu.memory_space<vmem>>, %arg6: memref<1x128xf32, #tpu.memory_space<vmem>>, %arg7: memref<1x4xf32, #tpu.memory_space<vmem>>, %arg8: memref<1x4xf32, #tpu.memory_space<vmem>>, %arg9: memref<1x4xf32, #tpu.memory_space<vmem>>, %arg10: memref<128x128xf32, #tpu.memory_space<vmem>>, %arg11: memref<1x128xf32, #tpu.memory_space<vmem>>, %arg12: memref<1x128xf32, #tpu.memory_space<vmem>>, %arg13: memref<1x128xf32, #tpu.memory_space<vmem>>, %arg14: memref<1x128xf32, #tpu.memory_space<vmem>>) attributes {dimension_semantics = [#tpu.dimension_semantics<arbitrary>, #tpu.dimension_semantics<arbitrary>], iteration_bounds = array<i64: 2, 4>, scalar_prefetch = 0 : i64, scratch_operands = 4 : i64, tpu.core_type = #tpu.core_type<tc>, window_params = [{transform_indices = @transform_0, window_bounds = array<i64: 128, 4>}, {pipeline_mode = #tpu.pipeline_mode<synchronous>, transform_indices = @transform_1, window_bounds = array<i64: 4, 128>}, {pipeline_mode = #tpu.pipeline_mode<synchronous>, transform_indices = @transform_2, window_bounds = array<i64: 1, 128>}, {pipeline_mode = #tpu.pipeline_mode<synchronous>, transform_indices = @transform_3, window_bounds = array<i64: 1, 128>}, {pipeline_mode = #tpu.pipeline_mode<synchronous>, transform_indices = @transform_4, window_bounds = array<i64: 1, 128>}, {pipeline_mode = #tpu.pipeline_mode<synchronous>, transform_indices = @transform_5, window_bounds = array<i64: 1, 4>}, {pipeline_mode = #tpu.pipeline_mode<synchronous>, transform_indices = @transform_6, window_bounds = array<i64: 1, 4>}, {pipeline_mode = #tpu.pipeline_mode<synchronous>, transform_indices = @transform_7, window_bounds = array<i64: 1, 4>}, {transform_indices = @transform_8, window_bounds = array<i64: 128, 128>}]} {
    %c0 = arith.constant 0 : index
    %c0_0 = arith.constant 0 : index
    %0 = vector.load %arg2[%c0, %c0_0] : memref<128x4xf32, #tpu.memory_space<vmem>>, vector<128x4xf32>
    %c0_1 = arith.constant 0 : index
    %c0_2 = arith.constant 0 : index
    %1 = vector.load %arg3[%c0_1, %c0_2] : memref<4x128xf32, #tpu.memory_space<vmem>>, vector<4x128xf32>
    %cst = arith.constant dense<0.000000e+00> : vector<128x128xf32>
    %2 = tpu.matmul %0, %1, %cst {dimension_numbers = #tpu.dot_dimension_numbers<[1], [0], [0], [1], [0, 0, 1, 1], [], []>} : vector<128x4xf32>, vector<4x128xf32>, vector<128x128xf32> -> vector<128x128xf32>
    %c0_i32 = arith.constant 0 : i32
    %3 = arith.cmpi eq, %arg0, %c0_i32 : i32
    %4 = arith.extui %3 : i1 to i32
    %c0_i32_3 = arith.constant 0 : i32
    %5 = arith.cmpi ne, %4, %c0_i32_3 : i32
    scf.if %5 {
      %c0_i32_5 = arith.constant 0 : i32
      %9 = arith.cmpi eq, %arg1, %c0_i32_5 : i32
      %10 = arith.extui %9 : i1 to i32
      %c0_i32_6 = arith.constant 0 : i32
      %11 = arith.cmpi ne, %10, %c0_i32_6 : i32
      scf.if %11 {
        %cst_18 = arith.constant 0.000000e+00 : f32
        %26 = vector.broadcast %cst_18 : f32 to vector<1x128xf32>
        %c0_19 = arith.constant 0 : index
        %c0_20 = arith.constant 0 : index
        %27 = vector.load %arg11[%c0_19, %c0_20] : memref<1x128xf32, #tpu.memory_space<vmem>>, vector<1x128xf32>
        tpu.vector_store %arg11[%c0_19, %c0_20], %26 {strides = array<i32>} : memref<1x128xf32, #tpu.memory_space<vmem>>, vector<1x128xf32>,
        %cst_21 = arith.constant 0.000000e+00 : f32
        %28 = vector.broadcast %cst_21 : f32 to vector<1x128xf32>
        %c0_22 = arith.constant 0 : index
        %c0_23 = arith.constant 0 : index
        %29 = vector.load %arg12[%c0_22, %c0_23] : memref<1x128xf32, #tpu.memory_space<vmem>>, vector<1x128xf32>
        tpu.vector_store %arg12[%c0_22, %c0_23], %28 {strides = array<i32>} : memref<1x128xf32, #tpu.memory_space<vmem>>, vector<1x128xf32>,
      } else {
      }
      %c0_7 = arith.constant 0 : index
      %c0_8 = arith.constant 0 : index
      %12 = vector.load %arg11[%c0_7, %c0_8] : memref<1x128xf32, #tpu.memory_space<vmem>>, vector<1x128xf32>
      %cst_9 = arith.constant dense<0.000000e+00> : vector<128xf32>
      %13 = vector.multi_reduction <add>, %2, %cst_9 [0] : vector<128x128xf32> to vector<128xf32>
      %14 = vector.shape_cast %13 : vector<128xf32> to vector<1x128xf32>
      %15 = arith.addf %12, %14 : vector<1x128xf32>
      %c0_10 = arith.constant 0 : index
      %c0_11 = arith.constant 0 : index
      %16 = vector.load %arg11[%c0_10, %c0_11] : memref<1x128xf32, #tpu.memory_space<vmem>>, vector<1x128xf32>
      tpu.vector_store %arg11[%c0_10, %c0_11], %15 {strides = array<i32>} : memref<1x128xf32, #tpu.memory_space<vmem>>, vector<1x128xf32>,
      %c0_12 = arith.constant 0 : index
      %c0_13 = arith.constant 0 : index
      %17 = vector.load %arg12[%c0_12, %c0_13] : memref<1x128xf32, #tpu.memory_space<vmem>>, vector<1x128xf32>
      %18 = arith.mulf %2, %2 : vector<128x128xf32>
      %cst_14 = arith.constant dense<0.000000e+00> : vector<128xf32>
      %19 = vector.multi_reduction <add>, %18, %cst_14 [0] : vector<128x128xf32> to vector<128xf32>
      %20 = vector.shape_cast %19 : vector<128xf32> to vector<1x128xf32>
      %21 = arith.addf %17, %20 : vector<1x128xf32>
      %c0_15 = arith.constant 0 : index
      %c0_16 = arith.constant 0 : index
      %22 = vector.load %arg12[%c0_15, %c0_16] : memref<1x128xf32, #tpu.memory_space<vmem>>, vector<1x128xf32>
      tpu.vector_store %arg12[%c0_15, %c0_16], %21 {strides = array<i32>} : memref<1x128xf32, #tpu.memory_space<vmem>>, vector<1x128xf32>,
      %c3_i32 = arith.constant 3 : i32
      %23 = arith.cmpi eq, %arg1, %c3_i32 : i32
      %24 = arith.extui %23 : i1 to i32
      %c0_i32_17 = arith.constant 0 : i32
      %25 = arith.cmpi ne, %24, %c0_i32_17 : i32
      scf.if %25 {
        %c0_18 = arith.constant 0 : index
        %c0_19 = arith.constant 0 : index
        %26 = vector.load %arg11[%c0_18, %c0_19] : memref<1x128xf32, #tpu.memory_space<vmem>>, vector<1x128xf32>
        %cst_20 = arith.constant 0.001953125 : f32
        %27 = vector.broadcast %cst_20 : f32 to vector<1x128xf32>
        %28 = arith.mulf %26, %27 : vector<1x128xf32>
        %c0_21 = arith.constant 0 : index
        %c0_22 = arith.constant 0 : index
        %29 = vector.load %arg12[%c0_21, %c0_22] : memref<1x128xf32, #tpu.memory_space<vmem>>, vector<1x128xf32>
        %cst_23 = arith.constant 0.001953125 : f32
        %30 = vector.broadcast %cst_23 : f32 to vector<1x128xf32>
        %31 = arith.mulf %29, %30 : vector<1x128xf32>
        %32 = arith.mulf %28, %28 : vector<1x128xf32>
        %33 = arith.subf %31, %32 : vector<1x128xf32>
        %cst_24 = arith.constant 0.000000e+00 : f32
        %34 = vector.broadcast %cst_24 : f32 to vector<1x128xf32>
        %35 = arith.maximumf %33, %34 : vector<1x128xf32>
        %cst_25 = arith.constant 9.99999974E-6 : f32
        %36 = vector.broadcast %cst_25 : f32 to vector<1x128xf32>
        %37 = arith.addf %35, %36 : vector<1x128xf32>
        %38 = math.rsqrt %37 : vector<1x128xf32>
        %c0_26 = arith.constant 0 : index
        %c0_27 = arith.constant 0 : index
        %39 = vector.load %arg4[%c0_26, %c0_27] : memref<1x128xf32, #tpu.memory_space<vmem>>, vector<1x128xf32>
        %40 = arith.mulf %39, %38 : vector<1x128xf32>
        %c0_28 = arith.constant 0 : index
        %c0_29 = arith.constant 0 : index
        %41 = vector.load %arg13[%c0_28, %c0_29] : memref<1x128xf32, #tpu.memory_space<vmem>>, vector<1x128xf32>
        tpu.vector_store %arg13[%c0_28, %c0_29], %40 {strides = array<i32>} : memref<1x128xf32, #tpu.memory_space<vmem>>, vector<1x128xf32>,
        %c0_30 = arith.constant 0 : index
        %c0_31 = arith.constant 0 : index
        %42 = vector.load %arg5[%c0_30, %c0_31] : memref<1x128xf32, #tpu.memory_space<vmem>>, vector<1x128xf32>
        %43 = arith.mulf %28, %40 : vector<1x128xf32>
        %44 = arith.subf %42, %43 : vector<1x128xf32>
        %c0_32 = arith.constant 0 : index
        %c0_33 = arith.constant 0 : index
        %45 = vector.load %arg14[%c0_32, %c0_33] : memref<1x128xf32, #tpu.memory_space<vmem>>, vector<1x128xf32>
        tpu.vector_store %arg14[%c0_32, %c0_33], %44 {strides = array<i32>} : memref<1x128xf32, #tpu.memory_space<vmem>>, vector<1x128xf32>,
      } else {
      }
    } else {
    }
    %c1_i32 = arith.constant 1 : i32
    %6 = arith.cmpi eq, %arg0, %c1_i32 : i32
    %7 = arith.extui %6 : i1 to i32
    %c0_i32_4 = arith.constant 0 : i32
    %8 = arith.cmpi ne, %7, %c0_i32_4 : i32
    scf.if %8 {
      %c0_5 = arith.constant 0 : index
      %c0_6 = arith.constant 0 : index
      %9 = vector.load %arg13[%c0_5, %c0_6] : memref<1x128xf32, #tpu.memory_space<vmem>>, vector<1x128xf32>
      %10 = vector.broadcast %9 : vector<1x128xf32> to vector<128x128xf32>
      %11 = arith.mulf %2, %10 : vector<128x128xf32>
      %c0_7 = arith.constant 0 : index
      %c0_8 = arith.constant 0 : index
      %12 = vector.load %arg14[%c0_7, %c0_8] : memref<1x128xf32, #tpu.memory_space<vmem>>, vector<1x128xf32>
      %13 = vector.broadcast %12 : vector<1x128xf32> to vector<128x128xf32>
      %14 = arith.addf %11, %13 : vector<128x128xf32>
      %cst_9 = arith.constant 0.000000e+00 : f32
      %15 = vector.broadcast %cst_9 : f32 to vector<128x128xf32>
      %16 = arith.cmpf ogt, %14, %15 : vector<128x128xf32>
      %c0_10 = arith.constant 0 : index
      %c0_11 = arith.constant 0 : index
      %17 = vector.load %arg6[%c0_10, %c0_11] : memref<1x128xf32, #tpu.memory_space<vmem>>, vector<1x128xf32>
      %18 = vector.broadcast %17 : vector<1x128xf32> to vector<128x128xf32>
      %19 = arith.mulf %18, %14 : vector<128x128xf32>
      %20 = arith.select %16, %14, %19 : vector<128x128xi1>, vector<128x128xf32>
      %c0_12 = arith.constant 0 : index
      %c0_13 = arith.constant 0 : index
      %21 = vector.load %arg10[%c0_12, %c0_13] : memref<128x128xf32, #tpu.memory_space<vmem>>, vector<128x128xf32>
      tpu.vector_store %arg10[%c0_12, %c0_13], %20 {strides = array<i32>} : memref<128x128xf32, #tpu.memory_space<vmem>>, vector<128x128xf32>,
    } else {
    }
    return
  }
  func.func @transform_0(%arg0: i32, %arg1: i32) -> (i32, i32) {
    %c0_i32 = arith.constant 0 : i32
    %c0_i32_0 = arith.constant 0 : i32
    return %arg1, %c0_i32 : i32, i32
  }
  func.func @transform_1(%arg0: i32, %arg1: i32) -> (i32, i32) {
    %c0_i32 = arith.constant 0 : i32
    %c0_i32_0 = arith.constant 0 : i32
    %c0_i32_1 = arith.constant 0 : i32
    return %c0_i32, %c0_i32_0 : i32, i32
  }
  func.func @transform_2(%arg0: i32, %arg1: i32) -> (i32, i32) {
    %c0_i32 = arith.constant 0 : i32
    %c0_i32_0 = arith.constant 0 : i32
    %c0_i32_1 = arith.constant 0 : i32
    return %c0_i32, %c0_i32_0 : i32, i32
  }
  func.func @transform_3(%arg0: i32, %arg1: i32) -> (i32, i32) {
    %c0_i32 = arith.constant 0 : i32
    %c0_i32_0 = arith.constant 0 : i32
    %c0_i32_1 = arith.constant 0 : i32
    return %c0_i32, %c0_i32_0 : i32, i32
  }
  func.func @transform_4(%arg0: i32, %arg1: i32) -> (i32, i32) {
    %c0_i32 = arith.constant 0 : i32
    %c0_i32_0 = arith.constant 0 : i32
    %c0_i32_1 = arith.constant 0 : i32
    return %c0_i32, %c0_i32_0 : i32, i32
  }
  func.func @transform_5(%arg0: i32, %arg1: i32) -> (i32, i32) {
    %c0_i32 = arith.constant 0 : i32
    %c0_i32_0 = arith.constant 0 : i32
    %c0_i32_1 = arith.constant 0 : i32
    return %c0_i32, %c0_i32_0 : i32, i32
  }
  func.func @transform_6(%arg0: i32, %arg1: i32) -> (i32, i32) {
    %c0_i32 = arith.constant 0 : i32
    %c0_i32_0 = arith.constant 0 : i32
    %c0_i32_1 = arith.constant 0 : i32
    return %c0_i32, %c0_i32_0 : i32, i32
  }
  func.func @transform_7(%arg0: i32, %arg1: i32) -> (i32, i32) {
    %c0_i32 = arith.constant 0 : i32
    %c0_i32_0 = arith.constant 0 : i32
    %c0_i32_1 = arith.constant 0 : i32
    return %c0_i32, %c0_i32_0 : i32, i32
  }
  func.func @transform_8(%arg0: i32, %arg1: i32) -> (i32, i32) {
    %0 = arith.muli %arg1, %arg0 : i32
    %c0_i32 = arith.constant 0 : i32
    %c0_i32_0 = arith.constant 0 : i32
    return %0, %c0_i32 : i32, i32
  }
}

</mosaic_0001>

<bundles_post_ra>
// kernel: tpu_custom_call.1
= control target key start
LH: loop header
LB: loop body
LE: loop exit
PB: predicated region body
PF: predicated region fallthrough
CT: control target
= control target key end

     0   :  { %13 = vsyncpa [#allocation7], 0  ;;  %s1486_s0 = inlined_call_operand.vmem [shape: f32[512,4], index: 0, kind: input, shape index: {}]   ;;  %s1487_s1 = inlined_call_operand.vmem [shape: f32[4,128], index: 1, kind: input, shape index: {}]   ;;  %s1488_s2 = inlined_call_operand.vmem [shape: f32[1,128], index: 2, kind: input, shape index: {}]   ;;  %s1489_s3 = inlined_call_operand.vmem [shape: f32[1,128], index: 3, kind: input, shape index: {}]   ;;  %s1490_s4 = inlined_call_operand.vmem [shape: f32[1,128], index: 4, kind: input, shape index: {}]   ;;  %s1491_s5 = inlined_call_operand.vmem [shape: f32[1,4], index: 5, kind: input, shape index: {}]   ;;  %s1492_s6 = inlined_call_operand.vmem [shape: f32[1,4], index: 6, kind: input, shape index: {}]   ;;  %s1493_s7 = inlined_call_operand.vmem [shape: f32[1,4], index: 7, kind: input, shape index: {}]   ;;  %s1494_s8 = inlined_call_operand.hbm [shape: f32[512,128], index: 8, kind: output, shape index: {}]  }
   0x1   :  { %15 = vsyncpa [#allocation7 + $0x1], 0  ;;  %s1142_s27 = smov 0   ;;  %s1144_s28 = smov 0  }
   0x2   :  { %s1146_s29 = smov 0   ;;  %s1148_s30 = smov 0  }
   0x3   :  { %s1150_s5 = smov 0   ;;  %s1152_s9 = smov 0  }
   0x4   :  { %s1154_s6 = smov 0   ;;  %s1156_s7 = smov 0  }
   0x5 LB: > { %s840_s10 = sadd.s32 4294967295, %s1091_s7   ;;  %s841_s11 = sadd.s32 4294967294, %s1091_s7   ;;  %s1091_s7 = sphi %s1156_s7, %s21_s7   ;;  %s1087_s6 = sphi %s1154_s6, %s1503_s6   ;;  %s1083_s9 = sphi %s1152_s9, %s1502_s9   ;;  %s1079_s5 = sphi %s1150_s5, %s1501_s5   ;;  %s1075_s30 = sphi %s1148_s30, %s1500_s30   ;;  %s1071_s29 = sphi %s1146_s29, %s1499_s29   ;;  %s1067_s28 = sphi %s1144_s28, %s1498_s28   ;;  %s1063_s27 = sphi %s1142_s27, %s1497_s27  }
   0x6   : > { %s30_s12 = sadd.s32 1, %s1083_s9  ;;  %s33_s13 = sadd.s32 1, %s1087_s6 }
   0x7   : > { %p31_p0 = scmp.ge.s32.totalorder %s30_s12, 4  ;;  %s210_s14 = smul.u32 %s1083_s9, %s1087_s6 }
   0x8   : > { %p225_p1 = scmp.ne.s32.totalorder %s1071_s29, %s1067_s28  ;;  %p226_p2 = scmp.eq.s32.totalorder %s840_s10, 7 }
   0x9   : > { %s1505_s12 = smov (%p31_p0, %s30_s12), 0  ;;  %s1507_s13 = smov (!%p31_p0, %s33_s13), %s1087_s6 }
   0xa   : > { %p231_p3 = scmp.ne.s32.totalorder %s1067_s28, %s1063_s27  ;;  %p35_p4 = scmp.ge.s32.totalorder %s1507_s13, 2 }
   0xb   : > { %p232_p5 = scmp.eq.s32.totalorder %s841_s11, 7  ;;  %p1195_p6 = por %p226_p2, %p225_p1 }
   0xc   : > { %p844_p7 = scmp.ge.s32.totalorder %s1091_s7, 1  ;;  %s1509_s13 = smov (%p35_p4, %s1507_s13), 0 }
   0xd   : > { %p1202_p8 = por %p232_p5, %p231_p3  ;;  %p280_p9 = scmp.lt.s32.totalorder %s1091_s7, 9 }
   0xe   : > { %s211_s17 = smul.u32 %s1509_s13, %s1505_s12  ;;  %s215_s19 = sadd.s32 1, %s1071_s29 }
   0xf   : > { %p281_p10 = pnand %p844_p7, %p280_p9 }
  0x10   : > { %s212_s18 = ssub.s32 %s210_s14, %s211_s17  ;;  %s311_s21 = sand.u32 (!%p281_p10), 1, %s1067_s28  }
  0x11   : > { %p213_p11 = scmp.eq.s32.totalorder %s212_s18, 0  ;;  %284 = sbr.rel (%p281_p10) target bundleno = 383 (0x17f), region = 52 }
  0x12   : > { %s846_s24 = sshll.u32 (!%p281_p10), %s1075_s30, 4  ;;  %s1220_s25 = sshll.u32 (!%p281_p10), %s311_s21, 7 }
  0x13   : > { %s1211_s20 = scalar_select %p213_p11, %s1071_s29, %s215_s19  }
  0x14   : > { %p315_p12 = scmp.lt.s32.totalorder (!%p281_p10), %s846_s24, 63  ;;  %s1274_s17 = scalar_lea.vmem (!%p281_p10), [#allocation6], %s1220_s25 }
  0x15   : > { %p865_p13 = scmp.ne.s32.totalorder (!%p281_p10), %s1079_s5, 0 }
  0x16   : > { %v338_v0 = vld [vmem:[%s1487_s1] sm:$0xf]  ;;  %vm388_vm0 = vcmask 1043456   ;;  %s1511_s24 = smov (!%p315_p12, %s846_s24), 63  ;;  %vm339_vm1 = vcmask 31744   ;;  %p866_p0 = scmp.ne.s32.totalorder (!%p865_p13), %s1075_s30, 0 }
  0x17   : > { %895 = vmatprep.subr.msk.mxu0 %vm388_vm0, %v338_v0  ;;  %921 = vmatprep.subr.msk.mxu1 %vm388_vm0, %v338_v0  ;;  %s847_s26 = sshll.u32 %s1511_s24, 3 }
  0x18   : > { %896 = vmatpush3.msk.msra.mxu0 %vm388_vm0, %v338_v0  ;;  %922 = vmatpush3.msk.msra.mxu1 %vm388_vm0, %v338_v0  ;;  %s318_s14 = scalar_lea.vmem %s1486_s0, %s847_s26 }
  0x19   : > { %v322_v1 = vld [vmem:[%s318_s14] sm:$0xff]  ;;  %v323_v3 = vld [vmem:[%s318_s14 + $0x8] sm:$0xff]  ;;  %v324_v5 = vld [vmem:[%s318_s14 + $0x10] sm:$0xff] }
  0x1a   : > { %v330_v2 = vld [vmem:[%s318_s14 + $0x40] sm:$0xff]  ;;  %897 = vmatprep.mubr.msk.f32.mxu0 %vm339_vm1, %v322_v1  ;;  %v331_v4 = vld [vmem:[%s318_s14 + $0x48] sm:$0xff]  ;;  %v332_v6 = vld [vmem:[%s318_s14 + $0x50] sm:$0xff] }
  0x1b   : > { %909 = vmatprep.mubr.msk.f32.mxu1 %vm339_vm1, %v330_v2  ;;  %898 = vmatmul.mubr.msk.f32.vlgmr.msra.gmra.mxu0 %vm339_vm1, %v323_v3  ;;  %v325_v7 = vld [vmem:[%s318_s14 + $0x18] sm:$0xff]  ;;  %v326_v9 = vld [vmem:[%s318_s14 + $0x20] sm:$0xff]  ;;  %v327_v11 = vld [vmem:[%s318_s14 + $0x28] sm:$0xff] }
  0x1c   : > { %910 = vmatmul.mubr.msk.f32.vlgmr.msra.gmra.mxu1 %vm339_vm1, %v331_v4  ;;  %900 = vmatprep.mubr.msk.f32.mxu0 %vm339_vm1, %v324_v5  ;;  %v333_v8 = vld [vmem:[%s318_s14 + $0x58] sm:$0xff]  ;;  %v334_v10 = vld [vmem:[%s318_s14 + $0x60] sm:$0xff]  ;;  %v335_v12 = vld [vmem:[%s318_s14 + $0x68] sm:$0xff] }
  0x1d   : > { %912 = vmatprep.mubr.msk.f32.mxu1 %vm339_vm1, %v332_v6  ;;  %v328_v13 = vld [vmem:[%s318_s14 + $0x30] sm:$0xff]  ;;  %v329_v15 = vld [vmem:[%s318_s14 + $0x38] sm:$0xff] }
  0x1e   : > { %v336_v14 = vld [vmem:[%s318_s14 + $0x70] sm:$0xff]  ;;  %v337_v16 = vld [vmem:[%s318_s14 + $0x78] sm:$0xff] }
  0x1f   : > { %901 = vmatmul.mubr.msk.f32.gmra.mxu0 %vm339_vm1, %v325_v7 }
  0x20   : > { %913 = vmatmul.mubr.msk.f32.gmra.mxu1 %vm339_vm1, %v333_v8  ;;  %903 = vmatprep.mubr.msk.f32.mxu0 %vm339_vm1, %v326_v9 }
  0x21   : > { %915 = vmatprep.mubr.msk.f32.mxu1 %vm339_vm1, %v334_v10 }
  0x23   : > { %904 = vmatmul.mubr.msk.f32.gmra.mxu0 %vm339_vm1, %v327_v11 }
  0x24   : > { %916 = vmatmul.mubr.msk.f32.gmra.mxu1 %vm339_vm1, %v335_v12  ;;  %906 = vmatprep.mubr.msk.f32.mxu0 %vm339_vm1, %v328_v13 }
  0x25   : > { %918 = vmatprep.mubr.msk.f32.mxu1 %vm339_vm1, %v336_v14 }
  0x27   : > { %907 = vmatmul.mubr.msk.f32.gmra.mxu0 %vm339_vm1, %v329_v15 }
  0x28   : > { %919 = vmatmul.mubr.msk.f32.gmra.mxu1 %vm339_vm1, %v337_v16 }
  0xdb   : > { %v1241_v17 = vpop.f32.mrf.mxu0 }
  0xdc   : > { %v1243_v18 = vpop.f32.mrf.mxu1 }
  0xdd   : > { %v1245_v19 = vpop.f32.mrf.mxu0 }
  0xde   : > { %v1247_v20 = vpop.f32.mrf.mxu1 }
  0xdf   : > { %v1249_v21 = vpop.f32.mrf.mxu0 }
  0xe0   : > { %v1251_v22 = vpop.f32.mrf.mxu1 }
  0xe1   : > { %v1253_v23 = vpop.f32.mrf.mxu0 }
  0xe2   : > { %v1255_v24 = vpop.f32.mrf.mxu1 }
  0xe3   : > { %v1257_v25 = vpop.f32.mrf.mxu0 }
  0xe4   : > { %v1259_v26 = vpop.f32.mrf.mxu1 }
  0xe5   : > { %v1261_v27 = vpop.f32.mrf.mxu0 }
  0xe6   : > { %v1263_v28 = vpop.f32.mrf.mxu1  ;;  %540 = sbr.rel (%p865_p13) target bundleno = 325 (0x145), region = 56 }
  0xe7   : > { %v1265_v29 = vpop.f32.mrf.mxu0 }
  0xe8   : > { %v1267_v30 = vpop.f32.mrf.mxu1 }
  0xe9   : > { %v1269_v31 = vpop.f32.mrf.mxu0 }
  0xea   : > { %v1271_v32 = vpop.f32.mrf.mxu1 }
  0xeb   : > { %544 = sbr.rel (%p866_p0) target bundleno = 242 (0xf2), region = 60 }
  0xf0   : > { %v1093_v33 = vmov 0.0  }
  0xf1   : > { %545 = vst [vmem:[#allocation2] sm:$0x1] %v1093_v33  ;;  %546 = vst [vmem:[#allocation3] sm:$0x1] %v1093_v33 }
  0xf2 PF: > { %v548_v34 = vadd.f32 %v1241_v17, %v1245_v19  ;;  %v572_v35 = vmul.f32 %v1245_v19, %v1245_v19  ;;  %v573_v36 = vmul.f32 %v1241_v17, %v1241_v17  ;;  %v574_v38 = vmul.f32 %v1253_v23, %v1253_v23  ;;  %p867_p1 = scmp.ne.s32.totalorder %s1075_s30, 3 }
  0xf3   : > { %v575_v40 = vmul.f32 %v1249_v21, %v1249_v21  ;;  %v576_v43 = vmul.f32 %v1261_v27, %v1261_v27  ;;  %v577_v46 = vmul.f32 %v1257_v25, %v1257_v25  ;;  %v578_v49 = vmul.f32 %v1269_v31, %v1269_v31 }
  0xf4   : > { %v549_v37 = vadd.f32 %v548_v34, %v1253_v23  ;;  %v588_v41 = vadd.f32 %v573_v36, %v572_v35  ;;  %v579_v52 = vmul.f32 %v1265_v29, %v1265_v29  ;;  %v580_v55 = vmul.f32 %v1247_v20, %v1247_v20 }
  0xf5   : > { %v581_v58 = vmul.f32 %v1243_v18, %v1243_v18  ;;  %v582_v61 = vmul.f32 %v1255_v24, %v1255_v24  ;;  %v583_v0 = vmul.f32 %v1251_v22, %v1251_v22  ;;  %v584_v3 = vmul.f32 %v1263_v28, %v1263_v28 }
  0xf6   : > { %v550_v39 = vadd.f32 %v1249_v21, %v549_v37  ;;  %v589_v44 = vadd.f32 %v588_v41, %v574_v38  ;;  %v585_v6 = vmul.f32 %v1259_v26, %v1259_v26  ;;  %v586_v9 = vmul.f32 %v1271_v32, %v1271_v32 }
  0xf7   : > { %v587_v12 = vmul.f32 %v1267_v30, %v1267_v30 }
  0xf8   : > { %v551_v42 = vadd.f32 %v550_v39, %v1261_v27  ;;  %v590_v47 = vadd.f32 %v589_v44, %v575_v40  ;;  %v547_v40 = vld [vmem:[#allocation2] sm:$0x1] }
  0xfa   : > { %v552_v45 = vadd.f32 %v1257_v25, %v551_v42  ;;  %v591_v50 = vadd.f32 %v590_v47, %v576_v43 }
  0xfc   : > { %v553_v48 = vadd.f32 %v552_v45, %v1269_v31  ;;  %v592_v53 = vadd.f32 %v591_v50, %v577_v46  ;;  %v571_v45 = vld [vmem:[#allocation3] sm:$0x1] }
  0xfe   : > { %v554_v51 = vadd.f32 %v1265_v29, %v553_v48  ;;  %v593_v56 = vadd.f32 %v592_v53, %v578_v49 }
 0x100   : > { %v555_v54 = vadd.f32 %v554_v51, %v1247_v20  ;;  %v594_v59 = vadd.f32 %v593_v56, %v579_v52 }
 0x102   : > { %v556_v57 = vadd.f32 %v1243_v18, %v555_v54  ;;  %v595_v62 = vadd.f32 %v594_v59, %v580_v55 }
 0x104   : > { %v557_v60 = vadd.f32 %v556_v57, %v1255_v24  ;;  %v596_v1 = vadd.f32 %v595_v62, %v581_v58 }
 0x106   : > { %v558_v63 = vadd.f32 %v1251_v22, %v557_v60  ;;  %v597_v4 = vadd.f32 %v596_v1, %v582_v61 }
 0x108   : > { %v559_v2 = vadd.f32 %v558_v63, %v1263_v28  ;;  %v598_v7 = vadd.f32 %v597_v4, %v583_v0 }
 0x10a   : > { %v560_v5 = vadd.f32 %v1259_v26, %v559_v2  ;;  %v599_v10 = vadd.f32 %v598_v7, %v584_v3 }
 0x10c   : > { %v561_v8 = vadd.f32 %v560_v5, %v1271_v32  ;;  %v600_v13 = vadd.f32 %v599_v10, %v585_v6 }
 0x10e   : > { %v562_v11 = vadd.f32 %v1267_v30, %v561_v8  ;;  %v601_v15 = vadd.f32 %v600_v13, %v586_v9 }
 0x110   : > { %v563_v14 = vrot.slane %v562_v11, 4  ;;  %v602_v33 = vadd.f32 %v601_v15, %v587_v12 }
 0x112   : > { %v564_v16 = vadd.f32 %v563_v14, %v562_v11  ;;  %v603_v35 = vrot.slane %v602_v33, 4 }
 0x114   : > { %v565_v34 = vrot.slane %v564_v16, 2  ;;  %v604_v37 = vadd.f32 %v603_v35, %v602_v33 }
 0x116   : > { %v566_v36 = vadd.f32 %v565_v34, %v564_v16  ;;  %v605_v39 = vrot.slane %v604_v37, 2 }
 0x118   : > { %v567_v38 = vrot.slane %v566_v36, 1  ;;  %v606_v42 = vadd.f32 %v605_v39, %v604_v37 }
 0x11a   : > { %v568_v41 = vadd.f32 %v567_v38, %v566_v36  ;;  %v607_v44 = vrot.slane %v606_v42, 1 }
 0x11c   : > { %v569_v43 = vadd.f32 %v568_v41, %v547_v40  ;;  %v608_v46 = vadd.f32 %v607_v44, %v606_v42  ;;  %614 = sbr.rel (%p867_p1) target bundleno = 325 (0x145), region = 64 }
 0x11e   : > { %570 = vst [vmem:[#allocation2] sm:$0x1] %v569_v43  ;;  %v609_v47 = vadd.f32 %v608_v46, %v571_v45 }
 0x120   : > { %610 = vst [vmem:[#allocation3] sm:$0x1] %v609_v47 }
 0x121   : > { %v624_v56 = vld [vmem:[%s1488_s2] sm:$0x1] }
 0x122   : > { %v627_v59 = vld [vmem:[%s1489_s3] sm:$0x1] }
 0x125   : > { %v615_v48 = vld [vmem:[#allocation2] sm:$0x1] }
 0x126   : > { %v616_v50 = vmul.f32 0.001953125, %v615_v48 }
 0x127   : > { %v617_v49 = vld [vmem:[#allocation3] sm:$0x1] }
 0x128   : > { %v618_v51 = vmul.f32 0.001953125, %v617_v49  ;;  %v619_v52 = vmul.f32 %v616_v50, %v616_v50 }
 0x12a   : > { %v620_v53 = vsub.f32 %v618_v51, %v619_v52 }
 0x12c   : > { %v621_v54 = vmax.f32 %v620_v53, 0.0 }
 0x12e   : > { %v622_v55 = vadd.f32 1e-05, %v621_v54 }
 0x130   : > { %997 = vrsqrt.f32 %v622_v55 }
 0x13d   : > { %v998_v57 = vpop.eup %997 }
 0x13e   : > { %v625_v58 = vmul.f32 %v998_v57, %v624_v56 }
 0x140   : > { %626 = vst [vmem:[#allocation4] sm:$0x1] %v625_v58  ;;  %v628_v60 = vmul.f32 %v625_v58, %v616_v50 }
 0x142   : > { %v629_v61 = vsub.f32 %v627_v59, %v628_v60 }
 0x144   : > { %630 = vst [vmem:[#allocation5] sm:$0x1] %v629_v61 }
 0x145 PF: > { %p868_p2 = scmp.ne.s32.totalorder %s1079_s5, 1 }
 0x147   : > { %634 = sbr.rel (%p868_p2) target bundleno = 358 (0x166), region = 68 }
 0x14c   : > { %v1334_v62 = vld [vmem:[#allocation4] ss:$0 sm:$0xff]  ;;  %v1336_v63 = vld [vmem:[#allocation5] ss:$0 sm:$0xff]  ;;  %v1349_v4 = vld [vmem:[%s1490_s4] ss:$0 sm:$0xff] }
 0x14d   : > { %v642_v0 = vmul.f32 %v1334_v62, %v1245_v19  ;;  %v643_v1 = vmul.f32 %v1241_v17, %v1334_v62  ;;  %v644_v2 = vmul.f32 %v1334_v62, %v1253_v23  ;;  %v645_v3 = vmul.f32 %v1249_v21, %v1334_v62 }
 0x14e   : > { %v646_v5 = vmul.f32 %v1334_v62, %v1261_v27  ;;  %v647_v19 = vmul.f32 %v1257_v25, %v1334_v62  ;;  %v648_v17 = vmul.f32 %v1334_v62, %v1269_v31  ;;  %v649_v23 = vmul.f32 %v1265_v29, %v1334_v62 }
 0x14f   : > { %v665_v6 = vadd.f32 %v1336_v63, %v642_v0  ;;  %v666_v21 = vadd.f32 %v1336_v63, %v643_v1  ;;  %v667_v7 = vadd.f32 %v1336_v63, %v644_v2  ;;  %v668_v8 = vadd.f32 %v1336_v63, %v645_v3 }
 0x150   : > { %v669_v9 = vadd.f32 %v1336_v63, %v646_v5  ;;  %v670_v27 = vadd.f32 %v1336_v63, %v647_v19  ;;  %v671_v25 = vadd.f32 %v1336_v63, %v648_v17  ;;  %v672_v31 = vadd.f32 %v1336_v63, %v649_v23 }
 0x151   : > { %vm681_vm2 = vcmp.gt.f32.partialorder %v665_v6, 0.0  ;;  %v704_v29 = vmul.f32 %v1349_v4, %v665_v6  ;;  %vm682_vm3 = vcmp.gt.f32.partialorder %v666_v21, 0.0  ;;  %v705_v10 = vmul.f32 %v1349_v4, %v666_v21 }
 0x152   : > { %vm683_vm4 = vcmp.gt.f32.partialorder %v667_v7, 0.0  ;;  %v706_v11 = vmul.f32 %v1349_v4, %v667_v7  ;;  %vm684_vm5 = vcmp.gt.f32.partialorder %v668_v8, 0.0  ;;  %v707_v12 = vmul.f32 %v1349_v4, %v668_v8 }
 0x153   : > { %v720_v13 = vsel %vm681_vm2, %v665_v6, %v704_v29  ;;  %v721_v14 = vsel %vm682_vm3, %v666_v21, %v705_v10  ;;  %vm685_vm6 = vcmp.gt.f32.partialorder %v669_v9, 0.0  ;;  %v708_v15 = vmul.f32 %v1349_v4, %v669_v9 }
 0x154   : > { %736 = vst [vmem:[%s1274_s17] sm:$0xff] %v720_v13  ;;  %737 = vst [vmem:[%s1274_s17 + $0x8] sm:$0xff] %v721_v14  ;;  %v722_v16 = vsel %vm683_vm4, %v667_v7, %v706_v11  ;;  %v723_v33 = vsel %vm684_vm5, %v668_v8, %v707_v12  ;;  %vm686_vm7 = vcmp.gt.f32.partialorder %v670_v27, 0.0  ;;  %v709_v34 = vmul.f32 %v1349_v4, %v670_v27 }
 0x155   : > { %738 = vst [vmem:[%s1274_s17 + $0x10] sm:$0xff] %v722_v16  ;;  %739 = vst [vmem:[%s1274_s17 + $0x18] sm:$0xff] %v723_v33  ;;  %v724_v35 = vsel %vm685_vm6, %v669_v9, %v708_v15  ;;  %vm687_vm8 = vcmp.gt.f32.partialorder %v671_v25, 0.0  ;;  %v710_v36 = vmul.f32 %v1349_v4, %v671_v25  ;;  %vm688_vm9 = vcmp.gt.f32.partialorder %v672_v31, 0.0 }
 0x156   : > { %740 = vst [vmem:[%s1274_s17 + $0x20] sm:$0xff] %v724_v35  ;;  %v725_v37 = vsel %vm686_vm7, %v670_v27, %v709_v34  ;;  %v711_v38 = vmul.f32 %v1349_v4, %v672_v31  ;;  %v650_v39 = vmul.f32 %v1334_v62, %v1247_v20  ;;  %v651_v40 = vmul.f32 %v1243_v18, %v1334_v62 }
 0x157   : > { %741 = vst [vmem:[%s1274_s17 + $0x28] sm:$0xff] %v725_v37  ;;  %v726_v41 = vsel %vm687_vm8, %v671_v25, %v710_v36  ;;  %v652_v42 = vmul.f32 %v1334_v62, %v1255_v24  ;;  %v653_v43 = vmul.f32 %v1251_v22, %v1334_v62  ;;  %v654_v44 = vmul.f32 %v1334_v62, %v1263_v28 }
 0x158   : > { %742 = vst [vmem:[%s1274_s17 + $0x30] sm:$0xff] %v726_v41  ;;  %v727_v45 = vsel %vm688_vm9, %v672_v31, %v711_v38  ;;  %v673_v46 = vadd.f32 %v1336_v63, %v650_v39  ;;  %v674_v20 = vadd.f32 %v1336_v63, %v651_v40  ;;  %v655_v18 = vmul.f32 %v1259_v26, %v1334_v62 }
 0x159   : > { %743 = vst [vmem:[%s1274_s17 + $0x38] sm:$0xff] %v727_v45  ;;  %v675_v47 = vadd.f32 %v1336_v63, %v652_v42  ;;  %v676_v24 = vadd.f32 %v1336_v63, %v653_v43  ;;  %v677_v22 = vadd.f32 %v1336_v63, %v654_v44  ;;  %v656_v28 = vmul.f32 %v1334_v62, %v1271_v32 }
 0x15a   : > { %vm689_vm10 = vcmp.gt.f32.partialorder %v673_v46, 0.0  ;;  %v712_v48 = vmul.f32 %v1349_v4, %v673_v46  ;;  %vm690_vm11 = vcmp.gt.f32.partialorder %v674_v20, 0.0  ;;  %v713_v49 = vmul.f32 %v1349_v4, %v674_v20 }
 0x15b   : > { %vm691_vm12 = vcmp.gt.f32.partialorder %v675_v47, 0.0  ;;  %v714_v26 = vmul.f32 %v1349_v4, %v675_v47  ;;  %vm692_vm13 = vcmp.gt.f32.partialorder %v676_v24, 0.0  ;;  %v715_v50 = vmul.f32 %v1349_v4, %v676_v24 }
 0x15c   : > { %v728_v51 = vsel %vm689_vm10, %v673_v46, %v712_v48  ;;  %v729_v52 = vsel %vm690_vm11, %v674_v20, %v713_v49  ;;  %vm693_vm14 = vcmp.gt.f32.partialorder %v677_v22, 0.0  ;;  %v716_v32 = vmul.f32 %v1349_v4, %v677_v22 }
 0x15d   : > { %744 = vst [vmem:[%s1274_s17 + $0x40] sm:$0xff] %v728_v51  ;;  %745 = vst [vmem:[%s1274_s17 + $0x48] sm:$0xff] %v729_v52  ;;  %v730_v53 = vsel %vm691_vm12, %v675_v47, %v714_v26  ;;  %v731_v54 = vsel %vm692_vm13, %v676_v24, %v715_v50  ;;  %v678_v55 = vadd.f32 %v1336_v63, %v655_v18 }
 0x15e   : > { %v679_v56 = vadd.f32 %v1336_v63, %v656_v28  ;;  %746 = vst [vmem:[%s1274_s17 + $0x50] sm:$0xff] %v730_v53  ;;  %747 = vst [vmem:[%s1274_s17 + $0x58] sm:$0xff] %v731_v54  ;;  %v732_v57 = vsel %vm693_vm14, %v677_v22, %v716_v32  ;;  %v657_v58 = vmul.f32 %v1267_v30, %v1334_v62 }
 0x15f   : > { %748 = vst [vmem:[%s1274_s17 + $0x60] sm:$0xff] %v732_v57  ;;  %vm694_vm15 = vcmp.gt.f32.partialorder %v678_v55, 0.0  ;;  %v717_v59 = vmul.f32 %v1349_v4, %v678_v55 }
 0x160   : > { %vm695_vm0 = vcmp.gt.f32.partialorder %v679_v56, 0.0  ;;  %v718_v60 = vmul.f32 %v1349_v4, %v679_v56  ;;  %v680_v61 = vadd.f32 %v1336_v63, %v657_v58 }
 0x161   : > { %v733_v0 = vsel %vm694_vm15, %v678_v55, %v717_v59 }
 0x162   : > { %v734_v1 = vsel %vm695_vm0, %v679_v56, %v718_v60  ;;  %749 = vst [vmem:[%s1274_s17 + $0x68] sm:$0xff] %v733_v0  ;;  %vm696_vm1 = vcmp.gt.f32.partialorder %v680_v61, 0.0  ;;  %v719_v2 = vmul.f32 %v1349_v4, %v680_v61 }
 0x163   : > { %750 = vst [vmem:[%s1274_s17 + $0x70] sm:$0xff] %v734_v1 }
 0x164   : > { %v735_v3 = vsel %vm696_vm1, %v680_v61, %v719_v2 }
 0x165   : > { %751 = vst [vmem:[%s1274_s17 + $0x78] sm:$0xff] %v735_v3 }
 0x166 PF: > { %s760_s26 = smul.u32 %s1075_s30, %s1079_s5  ;;  %s767_s10 = sshll.u32 %s1274_s17, 4  ;;  %s1426_s10 = int_to_ptr.vmem [resolvable:$true] %s767_s10 }
 0x167   : > { %s1435_s22 = scalar_lea.sflag [#allocation7], %s311_s21  ;;  %s999_s23 = scalar_lea.vmem %s1426_s10, 2048 }
 0x168   : > { %s877_s11 = sshll.u32 %s760_s26, 11  ;;  %p1000_p3 = scmp.ne.s32.totalorder %s1426_s10, %s999_s23 }
 0x169   : > { %s1431_s19 = scalar_lea.hbm %s1494_s8, %s877_s11  ;;  %s1094_s30 = smov [#allocation6]  }
 0x16a   : > { %p1001_p4 = pnand %p1000_p3, %p1195_p6  ;;  %s1003_s5 = sshll.u32 %s1094_s30, 4  ;;  %s1004_s5 = int_to_ptr.vmem [resolvable:$false] %s1003_s5 }
 0x16b   : > { %s1005_s17 = scalar_lea.vmem %s1004_s5, 4096  ;;  %p1006_p7 = scmp.lt.s32.totalorder %s1426_s10, %s1004_s5 }
 0x16c   : > { %p1002_p5 = pneg %p1001_p4  ;;  %p1007_p9 = scmp.lt.s32.totalorder %s1005_s17, %s999_s23 }
 0x16e   : > { %p1008_p10 = por %p1007_p9, %p1006_p7 }
 0x170   : > { %p1009_p11 = pnand %p1008_p10, %p1002_p5 }
 0x172   : > { %1012 = shalt.err (!%p1009_p11)
}
 0x173   : > { %s1013_s21 = scalar_lea.hbm %s1431_s19, 2048  ;;  %s1017_s26 = scalar_lea.hbm %s1494_s8, 8192 }
 0x174   : > { %p1014_p12 = scmp.ne.s32.totalorder %s1431_s19, %s1013_s21  ;;  %p1018_p1 = scmp.lt.s32.totalorder %s1431_s19, %s1494_s8 }
 0x175   : > { %p1019_p2 = scmp.lt.s32.totalorder %s1017_s26, %s1013_s21 }
 0x176   : > { %p1015_p13 = pnand %p1014_p12, %p1195_p6 }
 0x177   : > { %p1020_p3 = por %p1019_p2, %p1018_p1 }
 0x178   : > { %p1016_p0 = pneg %p1015_p13 }
 0x17a   : > { %p1021_p4 = pnand %p1020_p3, %p1016_p0 }
 0x17c   : > { %1024 = shalt.err (!%p1021_p4)
}
 0x17d   : > { %s1095_s18 = smov 128   ;;  %s1096_s23 = smov 8  }
 0x17e   : > { %923 = dma.vmem_to_hbm [thread:$0]  (%p1195_p6), %s1426_s10, 2048, %s1431_s19, %s1435_s22, %s1095_s18, %s1095_s18, %s1096_s23  }
 0x17f PF: > { %p929_p5 = scmp.ge.s32.totalorder %s1091_s7, 2  ;;  %s782_s30 = sand.u32 1, %s1063_s27  }
 0x180   : > { %s783_s5 = scalar_lea.sflag [#allocation7], %s782_s30 }
 0x181   : > { %p926_p7 = pnand %p929_p5, %p1202_p8 }
 0x183   : > { %p927_p9 = pneg %p926_p7 }
 0x185   : > { %1058 = dma.done.wait (%p927_p9), %s783_s5, 2048  }
 0x186   : > { %1060 = vsyncadd (%p927_p9), %s783_s5, 4294965248  ;;  %s21_s7 = sadd.s32 1, %s1091_s7   ;;  %s1497_s27 = smov %s1067_s28 }
 0x187   : > { %p18_p10 = scmp.ge.s32.totalorder %s21_s7, 10   ;;  %s1498_s28 = smov %s1071_s29 }
 0x188   : > { %s1499_s29 = smov %s1211_s20  ;;  %s1500_s30 = smov %s1083_s9 }
 0x189   : > { %s1501_s5 = smov %s1087_s6  ;;  %s1502_s9 = smov %s1505_s12 }
 0x18a   : > { %s1503_s6 = smov %s1509_s13  ;;  %20 = sbr.rel (!%p18_p10) target bundleno = 5 (0x5), region = 103 }
 0x18f   :  { %788 = vsyncpa [#allocation7], 1 }
 0x190   :  { %790 = vsyncpa [#allocation7 + $0x1], 1 }

</bundles_post_ra>
